<compile_context>
chip_gen: v7x
topology: tpu7x:2x2x1
jax: 0.10.0
libtpu: 0.0.40
codegen_flags: <defaults>
</compile_context>

<pallas_src>
import jax
import jax.numpy as jnp
from jax.experimental import pallas as pl
from jax.experimental.pallas import tpu as pltpu

LANES = 128
MAX_TILE_ROWS = 8192        # 8192 x 128 f32 = 4 MiB per input block
VMEM_LIMIT_BYTES = 48 << 20  # fits v5e/v6e (128 MiB) and v7x (64 MiB) physical


def _round_up(x, m):
    return ((x + m - 1) // m) * m


def _sublane_multiple(dtype):
    isz = jnp.dtype(dtype).itemsize
    if isz >= 4:
        return 8
    if isz == 2:
        return 16
    return 32


def _num_tensorcores():
    """TensorCores per chip to split the reduction across (2 on v7x megacore,
    1 on single-TC v5e/v6e).  Any detection failure falls back to 1, which is
    always correct; a false positive just adds a fully-masked size-1 slot."""
    try:
        info = pltpu.get_tpu_info()
        for name in ("num_cores", "core_count", "num_tensorcores",
                     "tensorcore_count", "num_cores_per_chip"):
            v = getattr(info, name, None)
            if isinstance(v, int) and 1 <= v <= 8:
                return v
    except Exception:
        pass
    try:
        kind = jax.devices()[0].device_kind.lower()
        if "7" in kind:          # v7x family: 2 TensorCores per chip
            return 2
    except Exception:
        pass
    return 1


def _sigmoid_f32(x):
    # sigmoid(x) == 0.5 * tanh(x/2) + 0.5 : one EUP transcendental per vreg
    # instead of exp + divide; exact same mathematical function, f32 math.
    xf = x.astype(jnp.float32)
    return 0.5 * jnp.tanh(0.5 * xf) + 0.5


def _jaccard_kernel(total_ref, pr_ref, gt_ref, out_ref):
    c = pl.program_id(0)               # core / partial-sum slot
    t = pl.program_id(1)               # tile index within this slot
    nt = pl.num_programs(1)
    tile_rows, lanes = pr_ref.shape
    tile_elems = tile_rows * lanes

    # Output block index is constant over t -> it stays VMEM-resident and is
    # used directly as the accumulator (no scratch, no final copy).
    @pl.when(t == 0)
    def _():
        out_ref[...] = jnp.zeros_like(out_ref)

    total = total_ref[0]
    g = c * nt + t                     # logical (unclamped) tile index
    tile_start = g * tile_elems
    is_full = tile_start + tile_elems <= total

    def accumulate(pr, gt):
        k = tile_rows // 8
        # (tile_rows,128)->(k,8,128) is sublane-granular (layout preserving);
        # the axis-0 sum is plain vreg-wise VPU adds (no XLU in the hot loop).
        out_ref[0, 0, :, :] += (gt * pr).reshape(k, 8, lanes).sum(axis=0)
        out_ref[0, 1, :, :] += pr.reshape(k, 8, lanes).sum(axis=0)
        out_ref[0, 2, :, :] += gt.reshape(k, 8, lanes).sum(axis=0)

    # Fast path: tile entirely in-bounds -> no masking work.
    @pl.when(is_full)
    def _():
        pr = _sigmoid_f32(pr_ref[...])
        gt = gt_ref[...].astype(jnp.float32)
        accumulate(pr, gt)

    # Slow path: boundary / duplicate (clamped) tile -> element-level mask.
    @pl.when(jnp.logical_not(is_full))
    def _():
        row_ids = jax.lax.broadcasted_iota(jnp.int32, (tile_rows, lanes), 0)
        lane_ids = jax.lax.broadcasted_iota(jnp.int32, (tile_rows, lanes), 1)
        idx = tile_start + row_ids * lanes + lane_ids
        valid = idx < total
        pr = jnp.where(valid, _sigmoid_f32(pr_ref[...]), 0.0)
        gt = jnp.where(valid, gt_ref[...].astype(jnp.float32), 0.0)
        accumulate(pr, gt)


def jaccard_loss(y_pr, y_gt, eps=1e-07):
    """1 - IoU(sigmoid(y_pr), y_gt). Matches JaccardLoss.forward (threshold=None)."""
    assert y_pr.shape == y_gt.shape
    total = int(y_pr.size)

    pr_flat = jnp.reshape(y_pr, (-1,))         # native dtype, no cast copy
    gt_flat = jnp.reshape(y_gt, (-1,))

    rows = total // LANES                      # 128-aligned prefix
    main = rows * LANES
    tail = total - main                        # ragged tail (< 128 elems)

    inter = jnp.float32(0.0)
    pr_sum = jnp.float32(0.0)
    gt_sum = jnp.float32(0.0)

    if rows > 0:
        pr2d = pr_flat[:main].reshape(rows, LANES)
        gt2d = gt_flat[:main].reshape(rows, LANES)

        # Dtype-aware sublane rounding (8 / 16 / 32 for 32/16/8-bit inputs).
        mult = max(_sublane_multiple(y_pr.dtype), _sublane_multiple(y_gt.dtype))
        tile_rows = min(MAX_TILE_ROWS, _round_up(rows, mult))

        n_tiles = pl.cdiv(rows, tile_rows)
        ncores = _num_tensorcores()
        tiles_per_core = pl.cdiv(n_tiles, ncores)

        def in_map(c, t, total_ref):
            # Clamp so we never request a fully out-of-range block; data of a
            # clamped (duplicate) block is fully masked out in the kernel.
            return (jnp.minimum(c * tiles_per_core + t, n_tiles - 1), 0)

        partials = pl.pallas_call(
            _jaccard_kernel,
            out_shape=jax.ShapeDtypeStruct((ncores, 3, 8, LANES), jnp.float32),
            grid_spec=pltpu.PrefetchScalarGridSpec(
                num_scalar_prefetch=1,
                grid=(ncores, tiles_per_core),
                in_specs=[
                    pl.BlockSpec((tile_rows, LANES), in_map),
                    pl.BlockSpec((tile_rows, LANES), in_map),
                ],
                out_specs=pl.BlockSpec((1, 3, 8, LANES),
                                       lambda c, t, total_ref: (c, 0, 0, 0)),
            ),
            compiler_params=pltpu.CompilerParams(
                dimension_semantics=("parallel", "arbitrary"),
                vmem_limit_bytes=VMEM_LIMIT_BYTES),
        )(jnp.array([main], jnp.int32), pr2d, gt2d)

        # Tiny epilogue: combine per-core (3,8,128) vector partial sums.
        inter = jnp.sum(partials[:, 0])
        pr_sum = jnp.sum(partials[:, 1])
        gt_sum = jnp.sum(partials[:, 2])

    if tail > 0:
        # Ragged (<128-element) tail folded in directly -- avoids jnp.pad
        # materializing full extra copies of both inputs in HBM.
        pr_t = _sigmoid_f32(pr_flat[main:])
        gt_t = gt_flat[main:].astype(jnp.float32)
        inter = inter + jnp.sum(gt_t * pr_t)
        pr_sum = pr_sum + jnp.sum(pr_t)
        gt_sum = gt_sum + jnp.sum(gt_t)

    eps = jnp.float32(eps)
    union = gt_sum + pr_sum - inter + eps
    return 1.0 - (inter + eps) / union


def _jaccard_loss_ref(y_pr, y_gt, eps=1e-07):
    pr = jax.nn.sigmoid(y_pr.astype(jnp.float32))
    gt = y_gt.astype(jnp.float32)
    inter = jnp.sum(gt * pr)
    union = jnp.sum(gt) + jnp.sum(pr) - inter + eps
    return 1.0 - (inter + eps) / union


if __name__ == "__main__":
    key = jax.random.PRNGKey(0)
    k1, k2 = jax.random.split(key)
    # NCHW logits and binary ground-truth mask
    y_pr = jax.random.normal(k1, (2, 4, 16, 16), dtype=jnp.float32)
    y_gt = (jax.random.uniform(k2, (2, 4, 16, 16)) > 0.5).astype(jnp.float32)

    loss = jax.block_until_ready(jaccard_loss(y_pr, y_gt))
    ref = jax.block_until_ready(_jaccard_loss_ref(y_pr, y_gt))

    # Tolerance accounts for sequential (non-tree) accumulation order and the
    # tanh-form sigmoid; differences on the final loss are ~1e-7.
    assert jnp.allclose(loss, ref, rtol=1e-5, atol=1e-5), (loss, ref)
    print("KERNEL_OK")
</pallas_src>

<mosaic_0001>
module attributes {stable_mosaic.version = 11 : i64} {
  func.func @_jaccard_kernel(%arg0: i32, %arg1: i32, %arg2: memref<1xi32, #tpu.memory_space<smem>>, %arg3: memref<16x128xf32, #tpu.memory_space<vmem>>, %arg4: memref<16x128xf32, #tpu.memory_space<vmem>>, %arg5: memref<1x3x8x128xf32, #tpu.memory_space<vmem>>) attributes {dimension_semantics = [#tpu.dimension_semantics<parallel>, #tpu.dimension_semantics<arbitrary>], iteration_bounds = array<i64: 1, 1>, scalar_prefetch = 1 : i64, scratch_operands = 0 : i64, tpu.core_type = #tpu.core_type<tc>, window_params = [{transform_indices = @transform_0, window_bounds = array<i64: 16, 128>}, {transform_indices = @transform_1, window_bounds = array<i64: 16, 128>}, {transform_indices = @transform_2, window_bounds = array<i64: 1, 3, 8, 128>}]} {
    %c0_i32 = arith.constant 0 : i32
    %0 = arith.cmpi eq, %arg1, %c0_i32 : i32
    %1 = arith.extui %0 : i1 to i32
    %c0_i32_0 = arith.constant 0 : i32
    %2 = arith.cmpi ne, %1, %c0_i32_0 : i32
    scf.if %2 {
      %cst = arith.constant 0.000000e+00 : f32
      %14 = vector.broadcast %cst : f32 to vector<1x3x8x128xf32>
      %c0_4 = arith.constant 0 : index
      %c0_5 = arith.constant 0 : index
      %c0_6 = arith.constant 0 : index
      %c0_7 = arith.constant 0 : index
      %15 = vector.load %arg5[%c0_4, %c0_5, %c0_6, %c0_7] : memref<1x3x8x128xf32, #tpu.memory_space<vmem>>, vector<1x3x8x128xf32>
      tpu.vector_store %arg5[%c0_4, %c0_5, %c0_6, %c0_7], %14 {strides = array<i32>} : memref<1x3x8x128xf32, #tpu.memory_space<vmem>>, vector<1x3x8x128xf32>,
    } else {
    }
    %c0 = arith.constant 0 : index
    %3 = memref.load %arg2[%c0] : memref<1xi32, #tpu.memory_space<smem>>
    %c1_i32 = arith.constant 1 : i32
    %4 = arith.muli %arg0, %c1_i32 : i32
    %5 = arith.addi %4, %arg1 : i32
    %c2048_i32 = arith.constant 2048 : i32
    %6 = arith.muli %5, %c2048_i32 : i32
    %c2048_i32_1 = arith.constant 2048 : i32
    %7 = arith.addi %6, %c2048_i32_1 : i32
    %8 = arith.cmpi sle, %7, %3 : i32
    %9 = arith.extui %8 : i1 to i32
    %c0_i32_2 = arith.constant 0 : i32
    %10 = arith.cmpi ne, %9, %c0_i32_2 : i32
    scf.if %10 {
      %c0_4 = arith.constant 0 : index
      %c0_5 = arith.constant 0 : index
      %14 = vector.load %arg3[%c0_4, %c0_5] : memref<16x128xf32, #tpu.memory_space<vmem>>, vector<16x128xf32>
      %cst = arith.constant 5.000000e-01 : f32
      %15 = vector.broadcast %cst : f32 to vector<16x128xf32>
      %16 = arith.mulf %15, %14 : vector<16x128xf32>
      %17 = math.tanh %16 : vector<16x128xf32>
      %cst_6 = arith.constant 5.000000e-01 : f32
      %18 = vector.broadcast %cst_6 : f32 to vector<16x128xf32>
      %19 = arith.mulf %18, %17 : vector<16x128xf32>
      %cst_7 = arith.constant 5.000000e-01 : f32
      %20 = vector.broadcast %cst_7 : f32 to vector<16x128xf32>
      %21 = arith.addf %19, %20 : vector<16x128xf32>
      %c0_8 = arith.constant 0 : index
      %c0_9 = arith.constant 0 : index
      %22 = vector.load %arg4[%c0_8, %c0_9] : memref<16x128xf32, #tpu.memory_space<vmem>>, vector<16x128xf32>
      %c0_10 = arith.constant 0 : index
      %c0_11 = arith.constant 0 : index
      %c0_12 = arith.constant 0 : index
      %c0_13 = arith.constant 0 : index
      %23 = vector.load %arg5[%c0_10, %c0_11, %c0_12, %c0_13] : memref<1x3x8x128xf32, #tpu.memory_space<vmem>>, vector<1x1x8x128xf32>
      %24 = vector.shape_cast %23 : vector<1x1x8x128xf32> to vector<8x128xf32>
      %25 = arith.mulf %22, %21 : vector<16x128xf32>
      %26 = vector.shape_cast %25 : vector<16x128xf32> to vector<2x8x128xf32>
      %cst_14 = arith.constant dense<0.000000e+00> : vector<8x128xf32>
      %27 = vector.multi_reduction <add>, %26, %cst_14 [0] : vector<2x8x128xf32> to vector<8x128xf32>
      %28 = arith.addf %24, %27 : vector<8x128xf32>
      %c0_15 = arith.constant 0 : index
      %c0_16 = arith.constant 0 : index
      %c0_17 = arith.constant 0 : index
      %c0_18 = arith.constant 0 : index
      %29 = vector.load %arg5[%c0_15, %c0_16, %c0_17, %c0_18] : memref<1x3x8x128xf32, #tpu.memory_space<vmem>>, vector<1x1x8x128xf32>
      %30 = vector.shape_cast %29 : vector<1x1x8x128xf32> to vector<8x128xf32>
      %31 = vector.shape_cast %28 : vector<8x128xf32> to vector<1x1x8x128xf32>
      tpu.vector_store %arg5[%c0_15, %c0_16, %c0_17, %c0_18], %31 {strides = array<i32>} : memref<1x3x8x128xf32, #tpu.memory_space<vmem>>, vector<1x1x8x128xf32>,
      %c0_19 = arith.constant 0 : index
      %c1 = arith.constant 1 : index
      %c0_20 = arith.constant 0 : index
      %c0_21 = arith.constant 0 : index
      %32 = vector.load %arg5[%c0_19, %c1, %c0_20, %c0_21] : memref<1x3x8x128xf32, #tpu.memory_space<vmem>>, vector<1x1x8x128xf32>
      %33 = vector.shape_cast %32 : vector<1x1x8x128xf32> to vector<8x128xf32>
      %34 = vector.shape_cast %21 : vector<16x128xf32> to vector<2x8x128xf32>
      %cst_22 = arith.constant dense<0.000000e+00> : vector<8x128xf32>
      %35 = vector.multi_reduction <add>, %34, %cst_22 [0] : vector<2x8x128xf32> to vector<8x128xf32>
      %36 = arith.addf %33, %35 : vector<8x128xf32>
      %c0_23 = arith.constant 0 : index
      %c1_24 = arith.constant 1 : index
      %c0_25 = arith.constant 0 : index
      %c0_26 = arith.constant 0 : index
      %37 = vector.load %arg5[%c0_23, %c1_24, %c0_25, %c0_26] : memref<1x3x8x128xf32, #tpu.memory_space<vmem>>, vector<1x1x8x128xf32>
      %38 = vector.shape_cast %37 : vector<1x1x8x128xf32> to vector<8x128xf32>
      %39 = vector.shape_cast %36 : vector<8x128xf32> to vector<1x1x8x128xf32>
      tpu.vector_store %arg5[%c0_23, %c1_24, %c0_25, %c0_26], %39 {strides = array<i32>} : memref<1x3x8x128xf32, #tpu.memory_space<vmem>>, vector<1x1x8x128xf32>,
      %c0_27 = arith.constant 0 : index
      %c2 = arith.constant 2 : index
      %c0_28 = arith.constant 0 : index
      %c0_29 = arith.constant 0 : index
      %40 = vector.load %arg5[%c0_27, %c2, %c0_28, %c0_29] : memref<1x3x8x128xf32, #tpu.memory_space<vmem>>, vector<1x1x8x128xf32>
      %41 = vector.shape_cast %40 : vector<1x1x8x128xf32> to vector<8x128xf32>
      %42 = vector.shape_cast %22 : vector<16x128xf32> to vector<2x8x128xf32>
      %cst_30 = arith.constant dense<0.000000e+00> : vector<8x128xf32>
      %43 = vector.multi_reduction <add>, %42, %cst_30 [0] : vector<2x8x128xf32> to vector<8x128xf32>
      %44 = arith.addf %41, %43 : vector<8x128xf32>
      %c0_31 = arith.constant 0 : index
      %c2_32 = arith.constant 2 : index
      %c0_33 = arith.constant 0 : index
      %c0_34 = arith.constant 0 : index
      %45 = vector.load %arg5[%c0_31, %c2_32, %c0_33, %c0_34] : memref<1x3x8x128xf32, #tpu.memory_space<vmem>>, vector<1x1x8x128xf32>
      %46 = vector.shape_cast %45 : vector<1x1x8x128xf32> to vector<8x128xf32>
      %47 = vector.shape_cast %44 : vector<8x128xf32> to vector<1x1x8x128xf32>
      tpu.vector_store %arg5[%c0_31, %c2_32, %c0_33, %c0_34], %47 {strides = array<i32>} : memref<1x3x8x128xf32, #tpu.memory_space<vmem>>, vector<1x1x8x128xf32>,
    } else {
    }
    %true = arith.constant true
    %11 = arith.xori %8, %true : i1
    %12 = arith.extui %11 : i1 to i32
    %c0_i32_3 = arith.constant 0 : i32
    %13 = arith.cmpi ne, %12, %c0_i32_3 : i32
    scf.if %13 {
      %14 = tpu.iota {dimensions = array<i32: 0>} : vector<16x128xi32>
      %15 = tpu.iota {dimensions = array<i32: 1>} : vector<16x128xi32>
      %c128_i32 = arith.constant 128 : i32
      %16 = vector.broadcast %c128_i32 : i32 to vector<16x128xi32>
      %17 = arith.muli %14, %16 : vector<16x128xi32>
      %18 = vector.broadcast %6 : i32 to vector<16x128xi32>
      %19 = arith.addi %18, %17 : vector<16x128xi32>
      %20 = arith.addi %19, %15 : vector<16x128xi32>
      %21 = vector.broadcast %3 : i32 to vector<16x128xi32>
      %22 = arith.cmpi slt, %20, %21 : vector<16x128xi32>
      %c0_4 = arith.constant 0 : index
      %c0_5 = arith.constant 0 : index
      %23 = vector.load %arg3[%c0_4, %c0_5] : memref<16x128xf32, #tpu.memory_space<vmem>>, vector<16x128xf32>
      %cst = arith.constant 5.000000e-01 : f32
      %24 = vector.broadcast %cst : f32 to vector<16x128xf32>
      %25 = arith.mulf %24, %23 : vector<16x128xf32>
      %26 = math.tanh %25 : vector<16x128xf32>
      %cst_6 = arith.constant 5.000000e-01 : f32
      %27 = vector.broadcast %cst_6 : f32 to vector<16x128xf32>
      %28 = arith.mulf %27, %26 : vector<16x128xf32>
      %cst_7 = arith.constant 5.000000e-01 : f32
      %29 = vector.broadcast %cst_7 : f32 to vector<16x128xf32>
      %30 = arith.addf %28, %29 : vector<16x128xf32>
      %cst_8 = arith.constant 0.000000e+00 : f32
      %31 = vector.broadcast %cst_8 : f32 to vector<16x128xf32>
      %32 = arith.select %22, %30, %31 : vector<16x128xi1>, vector<16x128xf32>
      %c0_9 = arith.constant 0 : index
      %c0_10 = arith.constant 0 : index
      %33 = vector.load %arg4[%c0_9, %c0_10] : memref<16x128xf32, #tpu.memory_space<vmem>>, vector<16x128xf32>
      %cst_11 = arith.constant 0.000000e+00 : f32
      %34 = vector.broadcast %cst_11 : f32 to vector<16x128xf32>
      %35 = arith.select %22, %33, %34 : vector<16x128xi1>, vector<16x128xf32>
      %c0_12 = arith.constant 0 : index
      %c0_13 = arith.constant 0 : index
      %c0_14 = arith.constant 0 : index
      %c0_15 = arith.constant 0 : index
      %36 = vector.load %arg5[%c0_12, %c0_13, %c0_14, %c0_15] : memref<1x3x8x128xf32, #tpu.memory_space<vmem>>, vector<1x1x8x128xf32>
      %37 = vector.shape_cast %36 : vector<1x1x8x128xf32> to vector<8x128xf32>
      %38 = arith.mulf %35, %32 : vector<16x128xf32>
      %39 = vector.shape_cast %38 : vector<16x128xf32> to vector<2x8x128xf32>
      %cst_16 = arith.constant dense<0.000000e+00> : vector<8x128xf32>
      %40 = vector.multi_reduction <add>, %39, %cst_16 [0] : vector<2x8x128xf32> to vector<8x128xf32>
      %41 = arith.addf %37, %40 : vector<8x128xf32>
      %c0_17 = arith.constant 0 : index
      %c0_18 = arith.constant 0 : index
      %c0_19 = arith.constant 0 : index
      %c0_20 = arith.constant 0 : index
      %42 = vector.load %arg5[%c0_17, %c0_18, %c0_19, %c0_20] : memref<1x3x8x128xf32, #tpu.memory_space<vmem>>, vector<1x1x8x128xf32>
      %43 = vector.shape_cast %42 : vector<1x1x8x128xf32> to vector<8x128xf32>
      %44 = vector.shape_cast %41 : vector<8x128xf32> to vector<1x1x8x128xf32>
      tpu.vector_store %arg5[%c0_17, %c0_18, %c0_19, %c0_20], %44 {strides = array<i32>} : memref<1x3x8x128xf32, #tpu.memory_space<vmem>>, vector<1x1x8x128xf32>,
      %c0_21 = arith.constant 0 : index
      %c1 = arith.constant 1 : index
      %c0_22 = arith.constant 0 : index
      %c0_23 = arith.constant 0 : index
      %45 = vector.load %arg5[%c0_21, %c1, %c0_22, %c0_23] : memref<1x3x8x128xf32, #tpu.memory_space<vmem>>, vector<1x1x8x128xf32>
      %46 = vector.shape_cast %45 : vector<1x1x8x128xf32> to vector<8x128xf32>
      %47 = vector.shape_cast %32 : vector<16x128xf32> to vector<2x8x128xf32>
      %cst_24 = arith.constant dense<0.000000e+00> : vector<8x128xf32>
      %48 = vector.multi_reduction <add>, %47, %cst_24 [0] : vector<2x8x128xf32> to vector<8x128xf32>
      %49 = arith.addf %46, %48 : vector<8x128xf32>
      %c0_25 = arith.constant 0 : index
      %c1_26 = arith.constant 1 : index
      %c0_27 = arith.constant 0 : index
      %c0_28 = arith.constant 0 : index
      %50 = vector.load %arg5[%c0_25, %c1_26, %c0_27, %c0_28] : memref<1x3x8x128xf32, #tpu.memory_space<vmem>>, vector<1x1x8x128xf32>
      %51 = vector.shape_cast %50 : vector<1x1x8x128xf32> to vector<8x128xf32>
      %52 = vector.shape_cast %49 : vector<8x128xf32> to vector<1x1x8x128xf32>
      tpu.vector_store %arg5[%c0_25, %c1_26, %c0_27, %c0_28], %52 {strides = array<i32>} : memref<1x3x8x128xf32, #tpu.memory_space<vmem>>, vector<1x1x8x128xf32>,
      %c0_29 = arith.constant 0 : index
      %c2 = arith.constant 2 : index
      %c0_30 = arith.constant 0 : index
      %c0_31 = arith.constant 0 : index
      %53 = vector.load %arg5[%c0_29, %c2, %c0_30, %c0_31] : memref<1x3x8x128xf32, #tpu.memory_space<vmem>>, vector<1x1x8x128xf32>
      %54 = vector.shape_cast %53 : vector<1x1x8x128xf32> to vector<8x128xf32>
      %55 = vector.shape_cast %35 : vector<16x128xf32> to vector<2x8x128xf32>
      %cst_32 = arith.constant dense<0.000000e+00> : vector<8x128xf32>
      %56 = vector.multi_reduction <add>, %55, %cst_32 [0] : vector<2x8x128xf32> to vector<8x128xf32>
      %57 = arith.addf %54, %56 : vector<8x128xf32>
      %c0_33 = arith.constant 0 : index
      %c2_34 = arith.constant 2 : index
      %c0_35 = arith.constant 0 : index
      %c0_36 = arith.constant 0 : index
      %58 = vector.load %arg5[%c0_33, %c2_34, %c0_35, %c0_36] : memref<1x3x8x128xf32, #tpu.memory_space<vmem>>, vector<1x1x8x128xf32>
      %59 = vector.shape_cast %58 : vector<1x1x8x128xf32> to vector<8x128xf32>
      %60 = vector.shape_cast %57 : vector<8x128xf32> to vector<1x1x8x128xf32>
      tpu.vector_store %arg5[%c0_33, %c2_34, %c0_35, %c0_36], %60 {strides = array<i32>} : memref<1x3x8x128xf32, #tpu.memory_space<vmem>>, vector<1x1x8x128xf32>,
    } else {
    }
    return
  }
  func.func @transform_0(%arg0: i32, %arg1: i32, %arg2: memref<1xi32, #tpu.memory_space<smem>>) -> (i32, i32) {
    %c1_i32 = arith.constant 1 : i32
    %0 = arith.muli %arg0, %c1_i32 : i32
    %1 = arith.addi %0, %arg1 : i32
    %c0_i32 = arith.constant 0 : i32
    %2 = arith.minsi %1, %c0_i32 : i32
    %c0_i32_0 = arith.constant 0 : i32
    %c0_i32_1 = arith.constant 0 : i32
    return %2, %c0_i32_0 : i32, i32
  }
  func.func @transform_1(%arg0: i32, %arg1: i32, %arg2: memref<1xi32, #tpu.memory_space<smem>>) -> (i32, i32) {
    %c1_i32 = arith.constant 1 : i32
    %0 = arith.muli %arg0, %c1_i32 : i32
    %1 = arith.addi %0, %arg1 : i32
    %c0_i32 = arith.constant 0 : i32
    %2 = arith.minsi %1, %c0_i32 : i32
    %c0_i32_0 = arith.constant 0 : i32
    %c0_i32_1 = arith.constant 0 : i32
    return %2, %c0_i32_0 : i32, i32
  }
  func.func @transform_2(%arg0: i32, %arg1: i32, %arg2: memref<1xi32, #tpu.memory_space<smem>>) -> (i32, i32, i32, i32) {
    %c0_i32 = arith.constant 0 : i32
    %c0_i32_0 = arith.constant 0 : i32
    %c0_i32_1 = arith.constant 0 : i32
    %c0_i32_2 = arith.constant 0 : i32
    return %arg0, %c0_i32, %c0_i32_0, %c0_i32_1 : i32, i32, i32, i32
  }
}

</mosaic_0001>

<bundles_post_ra>
// kernel: tpu_custom_call.1
= control target key start
LH: loop header
LB: loop body
LE: loop exit
PB: predicated region body
PF: predicated region fallthrough
CT: control target
= control target key end

     0   :  { %9 = vsyncpa [#allocation5], 0  ;;  %s356_s0 = inlined_call_operand.<no memory space> [shape: s32[1], index: 0, kind: input, shape index: {}]   ;;  %s357_s1 = inlined_call_operand.hbm [shape: f32[16,128], index: 1, kind: input, shape index: {}]   ;;  %s358_s2 = inlined_call_operand.hbm [shape: f32[16,128], index: 2, kind: input, shape index: {}]   ;;  %s359_s3 = inlined_call_operand.hbm [shape: f32[1,3,8,128], index: 3, kind: output, shape index: {}]  }
   0x1   :  { %10 = vsyncpa [#allocation8], 0 }
   0x2   :  { %11 = vsyncpa [#allocation6], 0  ;;  %s268_s12 = smov [#allocation4]   ;;  %s196_s16 = scalar_lea.hbm %s357_s1, 256 }
   0x3   :  { %s23_s13 = sshll.u32 %s268_s12, 4  ;;  %p197_p0 = scmp.ne.s32.totalorder %s357_s1, %s196_s16  ;;  %s24_s13 = int_to_ptr.vmem [resolvable:$true] %s23_s13 }
   0x4   :  { %p200_p1 = scmp.lt.u32.totalorder %s196_s16, %s357_s1 }
   0x6   :  { %p202_p2 = pnand %p200_p1, %p197_p0 }
   0x8   :  { %205 = shalt.err (!%p202_p2)
}
   0x9   :  { %s206_s21 = scalar_lea.vmem %s24_s13, 256  ;;  %p211_p4 = scmp.lt.s32.totalorder %s24_s13, %s24_s13 }
   0xa   :  { %p207_p3 = scmp.ne.s32.totalorder %s24_s13, %s206_s21  ;;  %p212_p5 = scmp.lt.s32.totalorder %s206_s21, %s206_s21 }
   0xc   :  { %p213_p6 = por %p212_p5, %p211_p4 }
   0xe   :  { %p214_p7 = pnand %p213_p6, %p207_p3 }
  0x10   :  { %217 = shalt.err (!%p214_p7)
}
  0x11   :  { %s269_s22 = smov 128   ;;  %s270_s23 = smov 8  }
  0x12   :  { %29 = dma.hbm_to_vmem [thread:$0]  %s357_s1, 256, %s24_s13, [#allocation5], %s269_s22, %s269_s22, %s270_s23  }
  0x13   :  { %s271_s26 = smov [#allocation7]   ;;  %s218_s30 = scalar_lea.hbm %s358_s2, 256 }
  0x14   :  { %s41_s27 = sshll.u32 %s271_s26, 4  ;;  %p219_p8 = scmp.ne.s32.totalorder %s358_s2, %s218_s30  ;;  %s42_s27 = int_to_ptr.vmem [resolvable:$true] %s41_s27 }
  0x15   :  { %p222_p9 = scmp.lt.u32.totalorder %s218_s30, %s358_s2 }
  0x17   :  { %p224_p10 = pnand %p222_p9, %p219_p8 }
  0x19   :  { %227 = shalt.err (!%p224_p10)
}
  0x1a   :  { %s228_s8 = scalar_lea.vmem %s42_s27, 256  ;;  %p233_p12 = scmp.lt.s32.totalorder %s42_s27, %s42_s27 }
  0x1b   :  { %p229_p11 = scmp.ne.s32.totalorder %s42_s27, %s228_s8  ;;  %p234_p13 = scmp.lt.s32.totalorder %s228_s8, %s228_s8 }
  0x1d   :  { %p235_p0 = por %p234_p13, %p233_p12 }
  0x1f   :  { %p236_p1 = pnand %p235_p0, %p229_p11 }
  0x21   :  { %239 = shalt.err (!%p236_p1)
}
  0x22   :  { %47 = dma.hbm_to_vmem [thread:$0]  %s358_s2, 256, %s42_s27, [#allocation8], %s269_s22, %s269_s22, %s270_s23  }
  0x23   :  { %262 = dma.done.wait [#allocation5], 256  }
  0x24   :  { %263 = vsyncadd [#allocation5], 4294967040 }
  0x25   :  { %264 = dma.done.wait [#allocation8], 256  }
  0x26   :  { %265 = vsyncadd [#allocation8], 4294967040  ;;  %v272_v0 = vmov 0.0   ;;  %p179_p2 = scmp.lt.s32.totalorder %s356_s0, 2048 }
  0x27   :  { %66 = vst [vmem:[#allocation9] sm:$0xff] %v272_v0  ;;  %67 = vst [vmem:[#allocation9 + $0x8] sm:$0xff] %v272_v0  ;;  %v77_v1 = vld [vmem:[#allocation4] sm:$0xff] (!%p179_p2)  ;;  %v78_v2 = vld [vmem:[#allocation4 + $0x8] sm:$0xff] (!%p179_p2) }
  0x28   :  { %68 = vst [vmem:[#allocation9 + $0x10] sm:$0xff] %v272_v0  ;;  %76 = sbr.rel (%p179_p2) target bundleno = 65 (0x41), region = 25  ;;  %v79_v3 = vmul.f32 (!%p179_p2), 0.5, %v77_v1  ;;  %v80_v4 = vmul.f32 (!%p179_p2), 0.5, %v78_v2  ;;  %v87_v5 = vld [vmem:[#allocation7] sm:$0xff] (!%p179_p2)  ;;  %v88_v6 = vld [vmem:[#allocation7 + $0x8] sm:$0xff] (!%p179_p2) }
  0x29   :  { %v102_v8 = vadd.f32 (!%p179_p2), %v88_v6, %v87_v5 }
  0x2a   :  { %188 = vtanh.f32 (!%p179_p2), %v79_v3 }
  0x2b   :  { %190 = vtanh.f32 (!%p179_p2), %v80_v4 }
  0x2e   :  { %v96_v17 = vld [vmem:[#allocation9 + $0x8] sm:$0xff] (!%p179_p2)  ;;  %v89_v20 = vld [vmem:[#allocation9] sm:$0xff] (!%p179_p2) }
  0x2f   :  { %v101_v7 = vld [vmem:[#allocation9 + $0x10] sm:$0xff] }
  0x30   :  { %v103_v9 = vadd.f32 %v102_v8, %v101_v7 }
  0x32   :  { %104 = vst [vmem:[#allocation9 + $0x10] sm:$0xff] %v103_v9 }
  0x34   :  { %v189_v10 = vpop.eup %188 }
  0x35   :  { %v191_v11 = vpop.eup %190  ;;  %v83_v12 = vmul.f32 0.5, %v189_v10 }
  0x36   :  { %v84_v13 = vmul.f32 0.5, %v191_v11 }
  0x37   :  { %v85_v14 = vadd.f32 0.5, %v83_v12 }
  0x38   :  { %v86_v15 = vadd.f32 0.5, %v84_v13 }
  0x39   :  { %v90_v16 = vmul.f32 %v87_v5, %v85_v14 }
  0x3a   :  { %v91_v18 = vmul.f32 %v88_v6, %v86_v15  ;;  %v97_v19 = vadd.f32 %v86_v15, %v85_v14 }
  0x3c   :  { %v92_v21 = vadd.f32 %v91_v18, %v90_v16  ;;  %v98_v22 = vadd.f32 %v97_v19, %v96_v17 }
  0x3e   :  { %v93_v23 = vadd.f32 %v92_v21, %v89_v20  ;;  %99 = vst [vmem:[#allocation9 + $0x8] sm:$0xff] %v98_v22 }
  0x40   :  { %94 = vst [vmem:[#allocation9] sm:$0xff] %v93_v23 }
  0x41 PF:  { %p181_p3 = scmp.ge.s32.totalorder %s356_s0, 2048 }
  0x42   :  { %v109_v24 = vlaneseq (!%p181_p3)  ;;  %v124_v25 = vld [vmem:[#allocation4] sm:$0xff] (!%p181_p3)  ;;  %v125_v26 = vld [vmem:[#allocation4 + $0x8] sm:$0xff] (!%p181_p3)  ;;  %v121_v33 = vstv (!%p181_p3), %s356_s0  ;;  %v136_v38 = vld [vmem:[#allocation7] sm:$0xff] (!%p181_p3) }
  0x43   :  { %108 = sbr.rel (%p181_p3) target bundleno = 93 (0x5d), region = 29  ;;  %v126_v27 = vmul.f32 (!%p181_p3), 0.5, %v124_v25  ;;  %v127_v28 = vmul.f32 (!%p181_p3), 0.5, %v125_v26  ;;  %v137_v39 = vld [vmem:[#allocation7 + $0x8] sm:$0xff] (!%p181_p3)  ;;  %v152_v42 = vld [vmem:[#allocation9 + $0x10] sm:$0xff] (!%p181_p3) }
  0x44   :  { %v110_v29 = vshrl.u32 (!%p181_p3), %v109_v24, 7  ;;  %v113_v30 = vand.u32 (!%p181_p3), 127, %v109_v24 }
  0x45   :  { %192 = vtanh.f32 (!%p181_p3), %v126_v27  ;;  %v147_v54 = vld [vmem:[#allocation9 + $0x8] sm:$0xff] (!%p181_p3) }
  0x46   :  { %v111_v31 = vadd.s32 (!%p181_p3), 8, %v110_v29  ;;  %v114_v32 = vmul.u32 (!%p181_p3), 128, %v110_v29  ;;  %194 = vtanh.f32 (!%p181_p3), %v127_v28 }
  0x47   :  { %v140_v57 = vld [vmem:[#allocation9] sm:$0xff] (!%p181_p3) }
  0x48   :  { %v115_v34 = vmul.u32 (!%p181_p3), 128, %v111_v31  ;;  %v119_v35 = vadd.s32 (!%p181_p3), %v114_v32, %v113_v30 }
  0x4a   :  { %v120_v36 = vadd.s32 %v115_v34, %v113_v30  ;;  %vm333_vm0 = vcmp.lt.s32.totalorder %v119_v35, %v121_v33 }
  0x4b   :  { %v138_v40 = vsel %vm333_vm0, %v136_v38, 0.0 }
  0x4c   :  { %vm123_vm1 = vcmp.lt.s32.totalorder %v120_v36, %v121_v33 }
  0x4d   :  { %v139_v41 = vsel %vm123_vm1, %v137_v39, 0.0 }
  0x4e   :  { %v153_v43 = vadd.f32 %v139_v41, %v138_v40 }
  0x4f   :  { %v193_v44 = vpop.eup %192 }
  0x50   :  { %v195_v45 = vpop.eup %194  ;;  %v130_v46 = vmul.f32 0.5, %v193_v44  ;;  %v154_v47 = vadd.f32 %v153_v43, %v152_v42 }
  0x51   :  { %v131_v48 = vmul.f32 0.5, %v195_v45 }
  0x52   :  { %v132_v49 = vadd.f32 0.5, %v130_v46  ;;  %155 = vst [vmem:[#allocation9 + $0x10] sm:$0xff] %v154_v47 }
  0x53   :  { %v133_v50 = vadd.f32 0.5, %v131_v48 }
  0x54   :  { %v134_v51 = vsel %vm333_vm0, %v132_v49, 0.0 }
  0x55   :  { %v135_v52 = vsel %vm123_vm1, %v133_v50, 0.0  ;;  %v141_v53 = vmul.f32 %v138_v40, %v134_v51 }
  0x56   :  { %v142_v55 = vmul.f32 %v139_v41, %v135_v52  ;;  %v148_v56 = vadd.f32 %v135_v52, %v134_v51 }
  0x58   :  { %v143_v58 = vadd.f32 %v142_v55, %v141_v53  ;;  %v149_v59 = vadd.f32 %v148_v56, %v147_v54 }
  0x5a   :  { %v144_v60 = vadd.f32 %v143_v58, %v140_v57  ;;  %150 = vst [vmem:[#allocation9 + $0x8] sm:$0xff] %v149_v59 }
  0x5c   :  { %145 = vst [vmem:[#allocation9] sm:$0xff] %v144_v60 }
  0x5d PF:  { %s273_s0 = smov [#allocation9]  }
  0x5e   :  { %s161_s15 = sshll.u32 %s273_s0, 4  ;;  %s162_s15 = int_to_ptr.vmem [resolvable:$true] %s161_s15 }
  0x5f   :  { %s240_s16 = scalar_lea.vmem %s162_s15, 384  ;;  %p245_p5 = scmp.lt.s32.totalorder %s162_s15, %s162_s15 }
  0x60   :  { %p241_p4 = scmp.ne.s32.totalorder %s162_s15, %s240_s16  ;;  %p246_p6 = scmp.lt.s32.totalorder %s240_s16, %s240_s16 }
  0x62   :  { %p247_p7 = por %p246_p6, %p245_p5 }
  0x64   :  { %p248_p8 = pnand %p247_p7, %p241_p4 }
  0x66   :  { %251 = shalt.err (!%p248_p8)
}
  0x67   :  { %s252_s19 = scalar_lea.hbm %s359_s3, 384 }
  0x68   :  { %p253_p9 = scmp.ne.s32.totalorder %s359_s3, %s252_s19  ;;  %p256_p10 = scmp.lt.u32.totalorder %s252_s19, %s359_s3 }
  0x6a   :  { %p258_p11 = pnand %p256_p10, %p253_p9 }
  0x6c   :  { %261 = shalt.err (!%p258_p11)
}
  0x6d   :  { %167 = dma.vmem_to_hbm [thread:$0]  %s162_s15, 384, %s359_s3, [#allocation6], %s269_s22, %s269_s22, %s270_s23  }
  0x6e   :  { %266 = dma.done.wait [#allocation6], 384  }
  0x6f   :  { %267 = vsyncadd [#allocation6], 4294966912 }
  0x70   :  { %171 = vsyncpa [#allocation5], 1 }
  0x71   :  { %172 = vsyncpa [#allocation8], 1 }
  0x72   :  { %173 = vsyncpa [#allocation6], 1 }

</bundles_post_ra>
